<compile_context>
chip_gen: v6e
topology: v6e:2x2x1
jax: 0.10.0
libtpu: 0.0.40
codegen_flags: <defaults>
</compile_context>

<pallas_src>
import functools

import jax
import jax.numpy as jnp
from jax.experimental import pallas as pl
from jax.experimental.pallas import tpu as pltpu


def div_sixteen_mul(v):
    v = int(v)
    m = v % 16
    return (v // 16) * 16 + (16 if m > 0 else 0)


def _largest_divisor_leq(n, cap):
    for d in range(min(n, cap), 0, -1):
        if n % d == 0:
            return d
    return 1


def _choose_tile_n(n, p, cb, itemsize, budget_bytes):
    """Largest multiple-of-128 divisor of n whose working set fits the budget.

    Working set ~= 2 inputs x 2 pipeline buffers x (cb, p, tn) in the input
    dtype + one (p, tn) f32 accumulator.
    """
    base = n // 128
    for d in range(base, 0, -1):
        if base % d:
            continue
        tn = 128 * d
        vmem = 4 * cb * p * tn * itemsize + p * tn * 4
        if vmem <= budget_bytes:
            return tn
    return 128


def _at_loss_kernel(s_ref, t_ref, out_ref, acc_ref, *, inv_c):
    c = pl.program_id(1)                       # channel-block (reduction) axis

    s = s_ref[...].astype(jnp.float32)         # (CB, P, TN)
    t = t_ref[...].astype(jnp.float32)

    # F.normalize(x, p=2, dim=1): L2-normalize each column over the P axis.
    # rsqrt(max(sum_sq, eps^2)) == 1 / max(||x||, eps) with eps = 1e-12,
    # so an EUP rsqrt + multiply replaces a full-tile divide.
    eps2 = jnp.float32(1e-24)
    inv_s = jax.lax.rsqrt(jnp.maximum(jnp.sum(s * s, axis=1, keepdims=True), eps2))
    inv_t = jax.lax.rsqrt(jnp.maximum(jnp.sum(t * t, axis=1, keepdims=True), eps2))

    # Single diff accumulator: sum over the channels in this block.
    contrib = jnp.sum(s * inv_s - t * inv_t, axis=0)          # (P, TN)

    @pl.when(c == 0)
    def _():
        acc_ref[...] = contrib                 # write directly, no zero-init

    @pl.when(c != 0)
    def _():
        acc_ref[...] += contrib

    @pl.when(c == pl.num_programs(1) - 1)
    def _():
        d = acc_ref[...] * jnp.float32(inv_c)  # mean over channels
        out_ref[0, 0] = jnp.sum(d * d)         # partial SSE for this N tile


def _prep(x_nchw):
    """NCHW -> [C, u*v, B*16*16] patches (single fused transpose, native dtype)."""
    B, C, H, W = x_nchw.shape
    h_p, w_p = div_sixteen_mul(H), div_sixteen_mul(W)
    if (h_p, w_p) != (H, W):
        # bilinear, half-pixel centers (matches F.interpolate(mode='bilinear',
        # align_corners=False) for this up-scale-to-multiple-of-16 case).
        x_nchw = jax.image.resize(x_nchw, (B, C, h_p, w_p), method="bilinear")
    u, v = h_p // 16, w_p // 16
    x = x_nchw.reshape(B, C, u, 16, v, 16)
    x = jnp.transpose(x, (1, 2, 4, 0, 3, 5))   # c u v b h w  (one transpose)
    return x.reshape(C, u * v, B * 16 * 16)


def at_loss_patch_linear(s_feature, t_feature, loss_weight=1.0,
                         tile_n=None, chan_block=None):
    """Inputs are NCHW, like the PyTorch module."""
    assert s_feature.shape[1] == t_feature.shape[1]
    assert s_feature.shape[0] == t_feature.shape[0]
    assert (div_sixteen_mul(s_feature.shape[2]) == div_sixteen_mul(t_feature.shape[2])
            and div_sixteen_mul(s_feature.shape[3]) == div_sixteen_mul(t_feature.shape[3]))
    C = s_feature.shape[1]

    t_p = _prep(t_feature)
    s_p = _prep(s_feature)
    _, P, N = s_p.shape
    assert t_p.shape == s_p.shape

    itemsize = jnp.dtype(s_p.dtype).itemsize
    if chan_block is None:
        plane_bytes = P * N * itemsize
        # Small per-channel planes: block several channels per grid step to
        # amortize the per-step overhead.  Large planes: one channel, tile N.
        chan_block = _largest_divisor_leq(C, 8) if plane_bytes <= (1 << 20) else 1
    assert C % chan_block == 0
    if tile_n is None:
        tile_n = _choose_tile_n(N, P, chan_block, itemsize,
                                budget_bytes=16 << 20)
    assert N % tile_n == 0 and (tile_n % 128 == 0 or tile_n == N)

    n_tiles = N // tile_n
    n_cblocks = C // chan_block

    kernel = functools.partial(_at_loss_kernel, inv_c=1.0 / C)
    partials = pl.pallas_call(
        kernel,
        out_shape=jax.ShapeDtypeStruct((n_tiles, 1), jnp.float32),
        grid_spec=pltpu.PrefetchScalarGridSpec(
            num_scalar_prefetch=0,
            grid=(n_tiles, n_cblocks),          # reduction (channels) innermost
            in_specs=[
                pl.BlockSpec((chan_block, P, tile_n), lambda nt, c: (c, 0, nt)),
                pl.BlockSpec((chan_block, P, tile_n), lambda nt, c: (c, 0, nt)),
            ],
            out_specs=pl.BlockSpec((1, 1), lambda nt, c: (nt, 0),
                                   memory_space=pltpu.MemorySpace.SMEM),
            scratch_shapes=[pltpu.VMEM((P, tile_n), jnp.float32)],
        ),
        compiler_params=pltpu.CompilerParams(
            dimension_semantics=("parallel", "arbitrary"),
            vmem_limit_bytes=40 << 20,          # safe on v7x's 64 MiB VMEM
        ),
    )(s_p, t_p)

    mse = jnp.sum(partials) * (1.0 / (P * N))   # .pow(2).mean()
    return jnp.float32(loss_weight) * (1.0 / C) * mse


def _reference(s_feature, t_feature, loss_weight=1.0):
    """Pure-JAX reference of the PyTorch forward (for correctness check)."""
    C = s_feature.shape[1]
    s_p = _prep(s_feature).astype(jnp.float32)
    t_p = _prep(t_feature).astype(jnp.float32)

    def att(x):
        norm = jnp.sqrt(jnp.sum(x * x, axis=1, keepdims=True))
        return jnp.mean(x / jnp.maximum(norm, 1e-12), axis=0)

    loss = jnp.mean((att(s_p) - att(t_p)) ** 2)
    return (1.0 / C) * loss_weight * loss


if __name__ == "__main__":
    key = jax.random.PRNGKey(0)
    k1, k2 = jax.random.split(key)
    # small shapes: B=2, C=12, H=20, W=24 (resized up to 32x32 -> P=4, N=512)
    B, C, H, W = 2, 12, 20, 24
    s_feature = jax.random.normal(k1, (B, C, H, W), dtype=jnp.float32)
    t_feature = jax.random.normal(k2, (B, C, H, W), dtype=jnp.float32)

    ref = _reference(s_feature, t_feature, loss_weight=1.0)

    # Default path: channel-blocked (CB=6), full-N tile.
    loss = at_loss_patch_linear(s_feature, t_feature, loss_weight=1.0)
    loss = jax.block_until_ready(loss)
    assert jnp.allclose(loss, ref, rtol=1e-4, atol=1e-6), (loss, ref)

    # Forced N-tiled / per-channel path: exercises the parallel N-tile axis,
    # per-tile partial outputs and the multi-step channel reduction.
    loss2 = at_loss_patch_linear(s_feature, t_feature, loss_weight=1.0,
                                 tile_n=128, chan_block=1)
    loss2 = jax.block_until_ready(loss2)
    assert jnp.allclose(loss2, ref, rtol=1e-4, atol=1e-6), (loss2, ref)

    print("KERNEL_OK")
</pallas_src>

<mosaic_0001>
module attributes {stable_mosaic.version = 11 : i64} {
  func.func @_at_loss_kernel(%arg0: i32, %arg1: i32, %arg2: memref<6x4x512xf32, #tpu.memory_space<vmem>>, %arg3: memref<6x4x512xf32, #tpu.memory_space<vmem>>, %arg4: memref<1x1xf32, #tpu.memory_space<smem>>, %arg5: memref<4x512xf32, #tpu.memory_space<vmem>>) attributes {dimension_semantics = [#tpu.dimension_semantics<parallel>, #tpu.dimension_semantics<arbitrary>], iteration_bounds = array<i64: 1, 2>, scalar_prefetch = 0 : i64, scratch_operands = 1 : i64, tpu.core_type = #tpu.core_type<tc>, window_params = [{transform_indices = @transform_0, window_bounds = array<i64: 6, 4, 512>}, {transform_indices = @transform_1, window_bounds = array<i64: 6, 4, 512>}, {transform_indices = @transform_2, window_bounds = array<i64: 1, 1>}]} {
    %c0 = arith.constant 0 : index
    %c0_0 = arith.constant 0 : index
    %c0_1 = arith.constant 0 : index
    %0 = vector.load %arg2[%c0, %c0_0, %c0_1] : memref<6x4x512xf32, #tpu.memory_space<vmem>>, vector<6x4x512xf32>
    %c0_2 = arith.constant 0 : index
    %c0_3 = arith.constant 0 : index
    %c0_4 = arith.constant 0 : index
    %1 = vector.load %arg3[%c0_2, %c0_3, %c0_4] : memref<6x4x512xf32, #tpu.memory_space<vmem>>, vector<6x4x512xf32>
    %2 = arith.mulf %0, %0 : vector<6x4x512xf32>
    %cst = arith.constant dense<0.000000e+00> : vector<6x512xf32>
    %3 = vector.multi_reduction <add>, %2, %cst [1] : vector<6x4x512xf32> to vector<6x512xf32>
    %4 = vector.shape_cast %3 : vector<6x512xf32> to vector<6x1x512xf32>
    %cst_5 = arith.constant 1.000000e-24 : f32
    %5 = vector.broadcast %cst_5 : f32 to vector<6x1x512xf32>
    %6 = arith.maximumf %4, %5 : vector<6x1x512xf32>
    %7 = math.rsqrt %6 : vector<6x1x512xf32>
    %8 = arith.mulf %1, %1 : vector<6x4x512xf32>
    %cst_6 = arith.constant dense<0.000000e+00> : vector<6x512xf32>
    %9 = vector.multi_reduction <add>, %8, %cst_6 [1] : vector<6x4x512xf32> to vector<6x512xf32>
    %10 = vector.shape_cast %9 : vector<6x512xf32> to vector<6x1x512xf32>
    %cst_7 = arith.constant 1.000000e-24 : f32
    %11 = vector.broadcast %cst_7 : f32 to vector<6x1x512xf32>
    %12 = arith.maximumf %10, %11 : vector<6x1x512xf32>
    %13 = math.rsqrt %12 : vector<6x1x512xf32>
    %14 = vector.broadcast %7 : vector<6x1x512xf32> to vector<6x4x512xf32>
    %15 = arith.mulf %0, %14 : vector<6x4x512xf32>
    %16 = vector.broadcast %13 : vector<6x1x512xf32> to vector<6x4x512xf32>
    %17 = arith.mulf %1, %16 : vector<6x4x512xf32>
    %18 = arith.subf %15, %17 : vector<6x4x512xf32>
    %cst_8 = arith.constant dense<0.000000e+00> : vector<4x512xf32>
    %19 = vector.multi_reduction <add>, %18, %cst_8 [0] : vector<6x4x512xf32> to vector<4x512xf32>
    %c0_i32 = arith.constant 0 : i32
    %20 = arith.cmpi eq, %arg1, %c0_i32 : i32
    %21 = arith.extui %20 : i1 to i32
    %c0_i32_9 = arith.constant 0 : i32
    %22 = arith.cmpi ne, %21, %c0_i32_9 : i32
    scf.if %22 {
      %c0_13 = arith.constant 0 : index
      %c0_14 = arith.constant 0 : index
      %29 = vector.load %arg5[%c0_13, %c0_14] : memref<4x512xf32, #tpu.memory_space<vmem>>, vector<4x512xf32>
      tpu.vector_store %arg5[%c0_13, %c0_14], %19 {strides = array<i32>} : memref<4x512xf32, #tpu.memory_space<vmem>>, vector<4x512xf32>,
    } else {
    }
    %c0_i32_10 = arith.constant 0 : i32
    %23 = arith.cmpi ne, %arg1, %c0_i32_10 : i32
    %24 = arith.extui %23 : i1 to i32
    %c0_i32_11 = arith.constant 0 : i32
    %25 = arith.cmpi ne, %24, %c0_i32_11 : i32
    scf.if %25 {
      %c0_13 = arith.constant 0 : index
      %c0_14 = arith.constant 0 : index
      %29 = vector.load %arg5[%c0_13, %c0_14] : memref<4x512xf32, #tpu.memory_space<vmem>>, vector<4x512xf32>
      %30 = arith.addf %29, %19 : vector<4x512xf32>
      %c0_15 = arith.constant 0 : index
      %c0_16 = arith.constant 0 : index
      %31 = vector.load %arg5[%c0_15, %c0_16] : memref<4x512xf32, #tpu.memory_space<vmem>>, vector<4x512xf32>
      tpu.vector_store %arg5[%c0_15, %c0_16], %30 {strides = array<i32>} : memref<4x512xf32, #tpu.memory_space<vmem>>, vector<4x512xf32>,
    } else {
    }
    %c1_i32 = arith.constant 1 : i32
    %26 = arith.cmpi eq, %arg1, %c1_i32 : i32
    %27 = arith.extui %26 : i1 to i32
    %c0_i32_12 = arith.constant 0 : i32
    %28 = arith.cmpi ne, %27, %c0_i32_12 : i32
    scf.if %28 {
      %c0_13 = arith.constant 0 : index
      %c0_14 = arith.constant 0 : index
      %29 = vector.load %arg5[%c0_13, %c0_14] : memref<4x512xf32, #tpu.memory_space<vmem>>, vector<4x512xf32>
      %cst_15 = arith.constant 0.0833333358 : f32
      %30 = vector.broadcast %cst_15 : f32 to vector<4x512xf32>
      %31 = arith.mulf %29, %30 : vector<4x512xf32>
      %32 = arith.mulf %31, %31 : vector<4x512xf32>
      %33 = vector.shape_cast %32 : vector<4x512xf32> to vector<1x4x512xf32>
      %cst_16 = arith.constant dense<0.000000e+00> : vector<1xf32>
      %34 = vector.multi_reduction <add>, %33, %cst_16 [1, 2] : vector<1x4x512xf32> to vector<1xf32>
      %35 = vector.shape_cast %34 : vector<1xf32> to vector<1x1x1xf32>
      %36 = vector.extract %35[0, 0, 0] : f32 from vector<1x1x1xf32>
      %c0_17 = arith.constant 0 : index
      %c0_18 = arith.constant 0 : index
      %37 = memref.load %arg4[%c0_17, %c0_18] : memref<1x1xf32, #tpu.memory_space<smem>>
      memref.store %36, %arg4[%c0_17, %c0_18] : memref<1x1xf32, #tpu.memory_space<smem>>
    } else {
    }
    return
  }
  func.func @transform_0(%arg0: i32, %arg1: i32) -> (i32, i32, i32) {
    %c0_i32 = arith.constant 0 : i32
    %c0_i32_0 = arith.constant 0 : i32
    return %arg1, %c0_i32, %arg0 : i32, i32, i32
  }
  func.func @transform_1(%arg0: i32, %arg1: i32) -> (i32, i32, i32) {
    %c0_i32 = arith.constant 0 : i32
    %c0_i32_0 = arith.constant 0 : i32
    return %arg1, %c0_i32, %arg0 : i32, i32, i32
  }
  func.func @transform_2(%arg0: i32, %arg1: i32) -> (i32, i32) {
    %c0_i32 = arith.constant 0 : i32
    %c0_i32_0 = arith.constant 0 : i32
    return %arg0, %c0_i32 : i32, i32
  }
}

</mosaic_0001>

<bundles_post_ra>
// kernel: tpu_custom_call.1
= control target key start
LH: loop header
LB: loop body
LE: loop exit
PB: predicated region body
PF: predicated region fallthrough
CT: control target
= control target key end

     0   :  { %7 = vsyncpa [#allocation4], 0  ;;  %s2103_s0 = inlined_call_operand.hbm [shape: f32[12,4,512], index: 0, kind: input, shape index: {}]   ;;  %s2104_s1 = inlined_call_operand.hbm [shape: f32[12,4,512], index: 1, kind: input, shape index: {}]   ;;  %s2105_s2 = inlined_call_operand.hbm [shape: f32[1,1], index: 2, kind: output, shape index: {}]  }
   0x1   :  { %9 = vsyncpa [#allocation4 + $0x1], 0 }
   0x2   :  { %10 = vsyncpa [#allocation7], 0 }
   0x3   :  { %12 = vsyncpa [#allocation7 + $0x1], 0 }
   0x4   :  { %13 = vsyncpa [#allocation5], 0  ;;  %s1499_s9 = smov 0   ;;  %s1501_s10 = smov 0  }
   0x5   :  { %s1503_s11 = smov 0   ;;  %s1505_s12 = smov 0  }
   0x6   :  { %s1507_s13 = smov 0   ;;  %s1509_s14 = smov 0  }
   0x7 LB: > { %s1150_s15 = sadd.s32 4294967295, %s1477_s14   ;;  %s28_s16 = sadd.s32 1, %s1473_s13  ;;  %s1477_s14 = sphi %s1509_s14, %s19_s14   ;;  %s1473_s13 = sphi %s1507_s13, %s2170_s13   ;;  %s1469_s12 = sphi %s1505_s12, %s2169_s12   ;;  %s1465_s11 = sphi %s1503_s11, %s2168_s11   ;;  %s1461_s10 = sphi %s1501_s10, %s2167_s10   ;;  %s1457_s9 = sphi %s1499_s9, %s2166_s9  }
   0x8   : > { %p29_p0 = scmp.ge.s32.totalorder %s28_s16, 2  ;;  %s40_s17 = sadd.s32 1, %s1465_s11 }
   0x9   : > { %p47_p1 = scmp.ne.s32.totalorder %s1465_s11, %s1461_s10  ;;  %p48_p2 = scmp.eq.s32.totalorder %s1477_s14, 0 }
   0xa   : > { %s2172_s16 = smov (%p29_p0, %s28_s16), 0  ;;  %p53_p4 = scmp.ne.s32.totalorder %s1461_s10, %s1457_s9 }
   0xb   : > { %p49_p3 = por %p48_p2, %p47_p1  ;;  %s35_s18 = ssub.s32 %s1473_s13, %s2172_s16 }
   0xc   : > { %p54_p5 = scmp.eq.s32.totalorder %s1150_s15, 0  ;;  %p38_p6 = scmp.eq.s32.totalorder %s35_s18, 0 }
   0xd   : > { %p1191_p8 = scmp.lt.s32.totalorder %s1477_s14, 2  ;;  %s1549_s21 = sand.u32 1, %s1465_s11  }
   0xe   : > { %p1540_p7 = por %p54_p5, %p53_p4  ;;  %s1169_s22 = smul.u32 1536, %s1473_s13 }
   0xf   : > { %s1546_s20 = scalar_select %p38_p6, %s1465_s11, %s40_s17  }
  0x10   : > { %s1171_s23 = smul.u32 96, %s1549_s21  ;;  %s144_s26 = scalar_lea.hbm %s2103_s0, %s1169_s22 }
  0x11   : > { %p1558_p9 = pnand %p1191_p8, %p49_p3  ;;  %s132_s30 = scalar_lea.sflag [#allocation4], %s1549_s21 }
  0x12   : > { %s135_s28 = scalar_lea.vmem [#allocation3], %s1171_s23  ;;  %s1479_s4 = smov [#allocation3]  }
  0x13   : > { %s145_s29 = sshll.u32 %s135_s28, 4  ;;  %p1355_p10 = pneg %p1558_p9  ;;  %s146_s29 = int_to_ptr.vmem [resolvable:$true] %s145_s29 }
  0x14   : > { %s1366_s3 = scalar_lea.vmem %s146_s29, 1536  ;;  %s1371_s5 = sshll.u32 %s1479_s4, 4  ;;  %s1372_s5 = int_to_ptr.vmem [resolvable:$false] %s1371_s5 }
  0x15   : > { %p1367_p11 = scmp.ne.s32.totalorder %s146_s29, %s1366_s3  ;;  %s1373_s6 = scalar_lea.vmem %s1372_s5, 3072 }
  0x16   : > { %p1374_p0 = scmp.lt.s32.totalorder %s146_s29, %s1372_s5  ;;  %p1375_p1 = scmp.lt.s32.totalorder %s1373_s6, %s1366_s3 }
  0x17   : > { %p1369_p12 = pnand %p1367_p11, %p1355_p10 }
  0x18   : > { %p1376_p2 = por %p1375_p1, %p1374_p0 }
  0x19   : > { %p1370_p13 = pneg %p1369_p12 }
  0x1b   : > { %p1377_p3 = pnand %p1376_p2, %p1370_p13 }
  0x1d   : > { %1380 = shalt.err (!%p1377_p3)
}
  0x1e   : > { %s1480_s7 = smov 256   ;;  %s1481_s8 = smov 16  }
  0x1f   : > { %1187 = dma.hbm_to_vmem [thread:$0]  (!%p1558_p9), %s144_s26, 1536, %s146_s29, %s132_s30, %s1480_s7, %s1480_s7, %s1481_s8  }
  0x20   : > { %p1157_p4 = scmp.ge.s32.totalorder %s1477_s14, 1  ;;  %p177_p5 = scmp.lt.s32.totalorder %s1477_s14, 3 }
  0x21   : > { %s168_s24 = scalar_lea.hbm %s2104_s1, %s1169_s22  ;;  %s159_s25 = scalar_lea.vmem [#allocation6], %s1171_s23 }
  0x22   : > { %p1572_p6 = pnand %p1157_p4, %p177_p5  ;;  %s169_s28 = sshll.u32 %s159_s25, 4  ;;  %s170_s28 = int_to_ptr.vmem [resolvable:$true] %s169_s28 }
  0x23   : > { %s156_s3 = scalar_lea.sflag [#allocation7], %s1549_s21  ;;  %s1394_s4 = scalar_lea.vmem %s170_s28, 1536 }
  0x24   : > { %p1395_p8 = scmp.ne.s32.totalorder %s170_s28, %s1394_s4  ;;  %s1482_s26 = smov [#allocation6]  }
  0x25   : > { %s1399_s29 = sshll.u32 %s1482_s26, 4  ;;  %s1400_s29 = int_to_ptr.vmem [resolvable:$false] %s1399_s29 }
  0x26   : > { %p1397_p11 = pnand %p1395_p8, %p1355_p10  ;;  %s1401_s30 = scalar_lea.vmem %s1400_s29, 3072 }
  0x27   : > { %p1402_p13 = scmp.lt.s32.totalorder %s170_s28, %s1400_s29  ;;  %p1403_p0 = scmp.lt.s32.totalorder %s1401_s30, %s1394_s4 }
  0x28   : > { %p1398_p12 = pneg %p1397_p11 }
  0x29   : > { %p1404_p1 = por %p1403_p0, %p1402_p13 }
  0x2b   : > { %p1405_p2 = pnand %p1404_p1, %p1398_p12 }
  0x2d   : > { %1408 = shalt.err (!%p1405_p2)
}
  0x2e   : > { %1190 = dma.hbm_to_vmem [thread:$0]  (!%p1558_p9), %s168_s24, 1536, %s170_s28, %s156_s3, %s1480_s7, %s1480_s7, %s1481_s8  }
  0x2f   : > { %181 = sbr.rel (%p1572_p6) target bundleno = 457 (0x1c9), region = 28 }
  0x34   : > { %s183_s21 = sand.u32 1, %s1461_s10  }
  0x35   : > { %s1173_s22 = smul.u32 96, %s183_s21  ;;  %s184_s23 = scalar_lea.sflag [#allocation4], %s183_s21 }
  0x37   : > { %s1590_s5 = scalar_lea.vmem [#allocation3], %s1173_s22 }
  0x38   : > { %1444 = dma.done.wait (%p1540_p7), %s184_s23, 1536  }
  0x39   : > { %1446 = vsyncadd (%p1540_p7), %s184_s23, 4294965760  ;;  %s193_s6 = scalar_lea.sflag [#allocation7], %s183_s21  ;;  %s1596_s17 = scalar_lea.vmem [#allocation6], %s1173_s22 }
  0x3a   : > { %1448 = dma.done.wait (%p1540_p7), %s193_s6, 1536  }
  0x3b   : > { %1450 = vsyncadd (%p1540_p7), %s193_s6, 4294965760  ;;  %v221_v0 = vld [vmem:[%s1590_s5] sm:$0xff]  ;;  %v222_v1 = vld [vmem:[%s1590_s5 + $0x8] sm:$0xff]  ;;  %vm293_vm0 = vcmask 1043456   ;;  %p1158_p7 = scmp.ne.s32.totalorder %s1469_s12, 0 }
  0x3c   : > { %v223_v2 = vld [vmem:[%s1590_s5 + $0x10] sm:$0xff]  ;;  %v224_v3 = vld [vmem:[%s1590_s5 + $0x18] sm:$0xff]  ;;  %v245_v4 = vmul.f32 %v221_v0, %v221_v0  ;;  %v246_v5 = vmul.f32 %v222_v1, %v222_v1  ;;  %v225_v22 = vld [vmem:[%s1590_s5 + $0x20] sm:$0xff] }
  0x3d   : > { %v247_v6 = vmul.f32 %v223_v2, %v223_v2  ;;  %v248_v7 = vmul.f32 %v224_v3, %v224_v3  ;;  %v226_v27 = vld [vmem:[%s1590_s5 + $0x28] sm:$0xff]  ;;  %v227_v32 = vld [vmem:[%s1590_s5 + $0x30] sm:$0xff]  ;;  %v228_v33 = vld [vmem:[%s1590_s5 + $0x38] sm:$0xff]  ;;  %v249_v34 = vmul.f32 %v225_v22, %v225_v22 }
  0x3e   : > { %v269_v8 = vcombine.high %v245_v4, %v245_v4  ;;  %v270_v9 = vcombine.high %v246_v5, %v246_v5  ;;  %v294_v12 = vsel %vm293_vm0, %v245_v4, 0.0  ;;  %v308_v14 = vsel %vm293_vm0, %v246_v5, 0.0  ;;  %v229_v37 = vld [vmem:[%s1590_s5 + $0x40] sm:$0xff]  ;;  %v230_v39 = vld [vmem:[%s1590_s5 + $0x48] sm:$0xff]  ;;  %v231_v40 = vld [vmem:[%s1590_s5 + $0x50] sm:$0xff] }
  0x3f   : > { %v271_v10 = vcombine.high %v247_v6, %v247_v6  ;;  %v272_v11 = vcombine.high %v248_v7, %v248_v7  ;;  %v295_v16 = vrot.slane %v294_v12, 4  ;;  %v322_v18 = vsel %vm293_vm0, %v247_v6, 0.0  ;;  %v232_v41 = vld [vmem:[%s1590_s5 + $0x58] sm:$0xff] }
  0x40   : > { %v301_v13 = vsel %vm293_vm0, %v269_v8, 0.0  ;;  %v315_v15 = vsel %vm293_vm0, %v270_v9, 0.0  ;;  %v309_v20 = vrot.slane %v308_v14, 4  ;;  %v323_v23 = vrot.slane %v322_v18, 4 }
  0x41   : > { %v302_v17 = vrot.slane %v301_v13, 4  ;;  %v329_v19 = vsel %vm293_vm0, %v271_v10, 0.0  ;;  %v316_v21 = vrot.slane %v315_v15, 4  ;;  %v336_v24 = vsel %vm293_vm0, %v248_v7, 0.0 }
  0x42   : > { %v343_v25 = vsel %vm293_vm0, %v272_v11, 0.0  ;;  %v330_v26 = vrot.slane %v329_v19, 4  ;;  %v296_v28 = vadd.f32 %v295_v16, %v294_v12  ;;  %v337_v30 = vrot.slane %v336_v24, 4 }
  0x43   : > { %v303_v29 = vadd.f32 %v302_v17, %v301_v13  ;;  %v344_v31 = vrot.slane %v343_v25, 4  ;;  %v310_v35 = vadd.f32 %v309_v20, %v308_v14  ;;  %v317_v36 = vadd.f32 %v316_v21, %v315_v15 }
  0x44   : > { %v324_v38 = vadd.f32 %v323_v23, %v322_v18  ;;  %v250_v42 = vmul.f32 %v226_v27, %v226_v27  ;;  %v331_v43 = vadd.f32 %v330_v26, %v329_v19  ;;  %v338_v44 = vadd.f32 %v337_v30, %v336_v24 }
  0x45   : > { %v345_v45 = vadd.f32 %v344_v31, %v343_v25  ;;  %v251_v46 = vmul.f32 %v227_v32, %v227_v32  ;;  %v252_v47 = vmul.f32 %v228_v33, %v228_v33  ;;  %v297_v48 = vrot.slane %v296_v28, 2 }
  0x46   : > { %v304_v49 = vrot.slane %v303_v29, 2  ;;  %v1622_v50 = vmul.f32 %v229_v37, %v229_v37  ;;  %v273_v51 = vcombine.high %v249_v34, %v249_v34  ;;  %v311_v52 = vrot.slane %v310_v35, 2 }
  0x47   : > { %v318_v53 = vrot.slane %v317_v36, 2  ;;  %v1624_v54 = vmul.f32 %v230_v39, %v230_v39  ;;  %v1626_v55 = vmul.f32 %v231_v40, %v231_v40  ;;  %v1628_v56 = vmul.f32 %v232_v41, %v232_v41 }
  0x48   : > { %v325_v57 = vrot.slane %v324_v38, 2  ;;  %v332_v58 = vrot.slane %v331_v43, 2  ;;  %v339_v59 = vrot.slane %v338_v44, 2  ;;  %v346_v60 = vrot.slane %v345_v45, 2 }
  0x49   : > { %v350_v61 = vsel %vm293_vm0, %v249_v34, 0.0  ;;  %v274_v62 = vcombine.high %v250_v42, %v250_v42  ;;  %v275_v63 = vcombine.high %v251_v46, %v251_v46  ;;  %v298_v0 = vadd.f32 %v297_v48, %v296_v28 }
  0x4a   : > { %v305_v1 = vadd.f32 %v304_v49, %v303_v29  ;;  %v276_v2 = vcombine.high %v252_v47, %v252_v47  ;;  %v312_v3 = vadd.f32 %v311_v52, %v310_v35  ;;  %v319_v4 = vadd.f32 %v318_v53, %v317_v36 }
  0x4b   : > { %v357_v5 = vsel %vm293_vm0, %v273_v51, 0.0  ;;  %v277_v6 = vcombine.high %v1622_v50, %v1622_v50  ;;  %v278_v7 = vcombine.high %v1624_v54, %v1624_v54  ;;  %v326_v8 = vadd.f32 %v325_v57, %v324_v38 }
  0x4c   : > { %v351_v9 = vrot.slane %v350_v61, 4  ;;  %v333_v10 = vadd.f32 %v332_v58, %v331_v43  ;;  %v340_v11 = vadd.f32 %v339_v59, %v338_v44  ;;  %v347_v12 = vadd.f32 %v346_v60, %v345_v45 }
  0x4d   : > { %v364_v13 = vsel %vm293_vm0, %v250_v42, 0.0  ;;  %v279_v14 = vcombine.high %v1626_v55, %v1626_v55  ;;  %v299_v15 = vrot.slane %v298_v0, 1  ;;  %v306_v16 = vrot.slane %v305_v1, 1 }
  0x4e   : > { %v358_v17 = vrot.slane %v357_v5, 4  ;;  %v280_v18 = vcombine.high %v1628_v56, %v1628_v56  ;;  %v313_v19 = vrot.slane %v312_v3, 1  ;;  %v320_v20 = vrot.slane %v319_v4, 1 }
  0x4f   : > { %v371_v21 = vsel %vm293_vm0, %v274_v62, 0.0  ;;  %v352_v22 = vadd.f32 %v351_v9, %v350_v61  ;;  %v365_v23 = vrot.slane %v364_v13, 4  ;;  %v378_v24 = vsel %vm293_vm0, %v251_v46, 0.0 }
  0x50   : > { %v385_v25 = vsel %vm293_vm0, %v275_v63, 0.0  ;;  %v327_v26 = vrot.slane %v326_v8, 1  ;;  %v334_v27 = vrot.slane %v333_v10, 1  ;;  %v341_v28 = vrot.slane %v340_v11, 1 }
  0x51   : > { %v348_v29 = vrot.slane %v347_v12, 1  ;;  %v1644_v30 = vadd.f32 %v299_v15, %v298_v0  ;;  %v1646_v31 = vadd.f32 %v306_v16, %v305_v1  ;;  %v359_v32 = vadd.f32 %v358_v17, %v357_v5 }
  0x52   : > { %v372_v33 = vrot.slane %v371_v21, 4  ;;  %v379_v34 = vrot.slane %v378_v24, 4  ;;  %v386_v35 = vrot.slane %v385_v25, 4  ;;  %v392_v36 = vsel %vm293_vm0, %v252_v47, 0.0 }
  0x53   : > { %v399_v37 = vsel %vm293_vm0, %v276_v2, 0.0  ;;  %v1650_v38 = vadd.f32 %v313_v19, %v312_v3  ;;  %v1652_v39 = vadd.f32 %v320_v20, %v319_v4  ;;  %v353_v40 = vrot.slane %v352_v22, 2 }
  0x54   : > { %v366_v41 = vadd.f32 %v365_v23, %v364_v13  ;;  %v1654_v42 = vadd.f32 %v327_v26, %v326_v8  ;;  %v1656_v43 = vadd.f32 %v334_v27, %v333_v10  ;;  %v1658_v44 = vadd.f32 %v341_v28, %v340_v11 }
  0x55   : > { %v1660_v45 = vadd.f32 %v348_v29, %v347_v12  ;;  %v393_v46 = vrot.slane %v392_v36, 4  ;;  %v400_v48 = vrot.slane %v399_v37, 4  ;;  %v406_v47 = vsel %vm293_vm0, %v1622_v50, 0.0 }
  0x56   : > { %v413_v49 = vsel %vm293_vm0, %v277_v6, 0.0  ;;  %v360_v51 = vrot.slane %v359_v32, 2  ;;  %v373_v52 = vadd.f32 %v372_v33, %v371_v21  ;;  %v380_v53 = vadd.f32 %v379_v34, %v378_v24 }
  0x57   : > { %v387_v57 = vadd.f32 %v386_v35, %v385_v25  ;;  %v354_v58 = vadd.f32 %v353_v40, %v352_v22  ;;  %v367_v59 = vrot.slane %v366_v41, 2  ;;  %v407_v60 = vrot.slane %v406_v47, 4 }
  0x58   : > { %v414_v61 = vrot.slane %v413_v49, 4  ;;  %v420_v62 = vsel %vm293_vm0, %v1624_v54, 0.0  ;;  %v427_v63 = vsel %vm293_vm0, %v278_v7, 0.0  ;;  %v434_v0 = vsel %vm293_vm0, %v1626_v55, 0.0 }
  0x59   : > { %v441_v50 = vsel %vm293_vm0, %v279_v14, 0.0  ;;  %v394_v1 = vadd.f32 %v393_v46, %v392_v36  ;;  %v401_v2 = vadd.f32 %v400_v48, %v399_v37  ;;  %v408_v3 = vadd.f32 %v407_v60, %v406_v47 }
  0x5a   : > { %v415_v4 = vadd.f32 %v414_v61, %v413_v49  ;;  %v421_v5 = vrot.slane %v420_v62, 4  ;;  %v428_v6 = vrot.slane %v427_v63, 4  ;;  %v435_v8 = vrot.slane %v434_v0, 4 }
  0x5b   : > { %v442_v9 = vrot.slane %v441_v50, 4  ;;  %v374_v10 = vrot.slane %v373_v52, 2  ;;  %v381_v11 = vrot.slane %v380_v53, 2  ;;  %v448_v54 = vsel %vm293_vm0, %v1628_v56, 0.0 }
  0x5c   : > { %v455_v7 = vsel %vm293_vm0, %v280_v18, 0.0  ;;  %v422_v12 = vadd.f32 %v421_v5, %v420_v62  ;;  %v429_v13 = vadd.f32 %v428_v6, %v427_v63  ;;  %v436_v55 = vadd.f32 %v435_v8, %v434_v0 }
  0x5d   : > { %v443_v15 = vadd.f32 %v442_v9, %v441_v50  ;;  %v388_v14 = vrot.slane %v387_v57, 2  ;;  %v395_v16 = vrot.slane %v394_v1, 2  ;;  %v449_v17 = vrot.slane %v448_v54, 4 }
  0x5e   : > { %v456_v19 = vrot.slane %v455_v7, 4  ;;  %v361_v20 = vadd.f32 %v360_v51, %v359_v32  ;;  %v402_v21 = vrot.slane %v401_v2, 2  ;;  %v409_v22 = vrot.slane %v408_v3, 2 }
  0x5f   : > { %v416_v23 = vrot.slane %v415_v4, 2  ;;  %v423_v24 = vrot.slane %v422_v12, 2  ;;  %v430_v25 = vrot.slane %v429_v13, 2  ;;  %v450_v26 = vadd.f32 %v449_v17, %v448_v54 }
  0x60   : > { %v457_v27 = vadd.f32 %v456_v19, %v455_v7  ;;  %v368_v28 = vadd.f32 %v367_v59, %v366_v41  ;;  %v375_v56 = vadd.f32 %v374_v10, %v373_v52  ;;  %v437_v29 = vrot.slane %v436_v55, 2 }
  0x61   : > { %v444_v18 = vrot.slane %v443_v15, 2  ;;  %v355_v33 = vrot.slane %v354_v58, 1  ;;  %v382_v34 = vadd.f32 %v381_v11, %v380_v53  ;;  %v389_v35 = vadd.f32 %v388_v14, %v387_v57 }
  0x62   : > { %v396_v36 = vadd.f32 %v395_v16, %v394_v1  ;;  %v403_v37 = vadd.f32 %v402_v21, %v401_v2  ;;  %v410_v40 = vadd.f32 %v409_v22, %v408_v3  ;;  %v451_v46 = vrot.slane %v450_v26, 2 }
  0x63   : > { %v458_v48 = vrot.slane %v457_v27, 2  ;;  %v362_v32 = vrot.slane %v361_v20, 1  ;;  %v417_v47 = vadd.f32 %v416_v23, %v415_v4  ;;  %v424_v49 = vadd.f32 %v423_v24, %v422_v12 }
  0x64   : > { %v431_v51 = vadd.f32 %v430_v25, %v429_v13  ;;  %v369_v60 = vrot.slane %v368_v28, 1  ;;  %v376_v61 = vrot.slane %v375_v56, 1  ;;  %v438_v62 = vadd.f32 %v437_v29, %v436_v55 }
  0x65   : > { %v445_v63 = vadd.f32 %v444_v18, %v443_v15  ;;  %v1674_v41 = vadd.f32 %v355_v33, %v354_v58  ;;  %v383_v52 = vrot.slane %v382_v34, 1  ;;  %v390_v59 = vrot.slane %v389_v35, 1  ;;  %v1732_v33 = vld [vmem:[%s1596_s17 + $0x18] sm:$0xff] }
  0x66   : > { %v397_v0 = vrot.slane %v396_v36, 1  ;;  %v404_v53 = vrot.slane %v403_v37, 1  ;;  %v411_v57 = vrot.slane %v410_v40, 1  ;;  %v452_v50 = vadd.f32 %v451_v46, %v450_v26  ;;  %2122 = vst [vmem:[#allocation14_spill] sm:$0xff] %v1732_v33 }
  0x67   : > { %v459_v1 = vadd.f32 %v458_v48, %v457_v27  ;;  %v1676_v2 = vadd.f32 %v362_v32, %v361_v20  ;;  %v418_v3 = vrot.slane %v417_v47, 1  ;;  %v425_v5 = vrot.slane %v424_v49, 1  ;;  %v1701_v20 = vld [vmem:[%s1596_s17] sm:$0xff]  ;;  %v1713_v27 = vld [vmem:[%s1596_s17 + $0x8] sm:$0xff] }
  0x68   : > { %v432_v4 = vrot.slane %v431_v51, 1  ;;  %v1678_v6 = vadd.f32 %v369_v60, %v368_v28  ;;  %v1680_v8 = vadd.f32 %v376_v61, %v375_v56  ;;  %v439_v9 = vrot.slane %v438_v62, 1  ;;  %2120 = vst [vmem:[#allocation12_spill] sm:$0xff] %v1713_v27 }
  0x69   : > { %v446_v58 = vrot.slane %v445_v63, 1  ;;  %v1682_v10 = vadd.f32 %v383_v52, %v382_v34  ;;  %v1684_v11 = vadd.f32 %v390_v59, %v389_v35  ;;  %v1686_v54 = vadd.f32 %v397_v0, %v396_v36  ;;  %v1760_v52 = vld [vmem:[%s1596_s17 + $0x40] sm:$0xff] }
  0x6a   : > { %v462_v7 = vmax.f32 %v1644_v30, 1e-24  ;;  %v1689_v12 = vadd.f32 %v404_v53, %v403_v37  ;;  %v1691_v13 = vadd.f32 %v411_v57, %v410_v40  ;;  %v453_v55 = vrot.slane %v452_v50, 1  ;;  %v1739_v37 = vld [vmem:[%s1596_s17 + $0x20] sm:$0xff]  ;;  %v1742_v40 = vld [vmem:[%s1596_s17 + $0x28] sm:$0xff]  ;;  %2127 = vst [vmem:[#allocation19_spill] sm:$0xff] %v1760_v52 }
  0x6b   : > { %v460_v15 = vrot.slane %v459_v1, 1  ;;  %v1693_v14 = vadd.f32 %v418_v3, %v417_v47  ;;  %v1695_v16 = vadd.f32 %v425_v5, %v424_v49  ;;  %v1697_v17 = vadd.f32 %v432_v4, %v431_v51  ;;  %2123 = vst [vmem:[#allocation15_spill] sm:$0xff] %v1739_v37  ;;  %2124 = vst [vmem:[#allocation16_spill] sm:$0xff] %v1742_v40  ;;  %v1749_v47 = vld [vmem:[%s1596_s17 + $0x30] sm:$0xff]  ;;  %v1752_v49 = vld [vmem:[%s1596_s17 + $0x38] sm:$0xff] }
  0x6c   : > { %v463_v19 = vmax.f32 %v1646_v31, 1e-24  ;;  %v1703_v21 = vadd.f32 %v439_v9, %v438_v62  ;;  %v1705_v30 = vadd.f32 %v446_v58, %v445_v63  ;;  %v464_v22 = vmax.f32 %v1650_v38, 1e-24  ;;  %2125 = vst [vmem:[#allocation17_spill] sm:$0xff] %v1749_v47  ;;  %2126 = vst [vmem:[#allocation18_spill] sm:$0xff] %v1752_v49 }
  0x6d   : > { %v465_v23 = vmax.f32 %v1652_v39, 1e-24  ;;  %v466_v24 = vmax.f32 %v1654_v42, 1e-24  ;;  %v467_v25 = vmax.f32 %v1656_v43, 1e-24  ;;  %1245 = vrsqrt.f32 %v462_v7 }
  0x6e   : > { %v468_v26 = vmax.f32 %v1658_v44, 1e-24  ;;  %v1715_v31 = vadd.f32 %v453_v55, %v452_v50  ;;  %v1717_v28 = vadd.f32 %v460_v15, %v459_v1  ;;  %v469_v56 = vmax.f32 %v1660_v45, 1e-24  ;;  %v1722_v39 = vld [vmem:[%s1596_s17 + $0x10] sm:$0xff]  ;;  %v1765_v57 = vld [vmem:[%s1596_s17 + $0x48] sm:$0xff] }
  0x6f   : > { %v470_v38 = vmax.f32 %v1674_v41, 1e-24  ;;  %2121 = vst [vmem:[#allocation13_spill] sm:$0xff] %v1722_v39  ;;  %v471_v42 = vmax.f32 %v1676_v2, 1e-24  ;;  %1247 = vrsqrt.f32 %v463_v19  ;;  %v510_v44 = vmul.f32 %v1701_v20, %v1701_v20  ;;  %2128 = vst [vmem:[#allocation20_spill] sm:$0xff] %v1765_v57 }
  0x70   : > { %v472_v43 = vmax.f32 %v1678_v6, 1e-24  ;;  %v473_v29 = vmax.f32 %v1680_v8, 1e-24  ;;  %v474_v45 = vmax.f32 %v1682_v10, 1e-24  ;;  %1249 = vrsqrt.f32 %v464_v22 }
  0x71   : > { %v475_v18 = vmax.f32 %v1684_v11, 1e-24  ;;  %v476_v34 = vmax.f32 %v1686_v54, 1e-24  ;;  %v477_v35 = vmax.f32 %v1689_v12, 1e-24  ;;  %1251 = vrsqrt.f32 %v465_v23 }
  0x72   : > { %v511_v36 = vmul.f32 %v1713_v27, %v1713_v27  ;;  %v478_v46 = vmax.f32 %v1691_v13, 1e-24  ;;  %v479_v48 = vmax.f32 %v1693_v14, 1e-24  ;;  %1253 = vrsqrt.f32 %v466_v24  ;;  %v1768_v50 = vld [vmem:[%s1596_s17 + $0x50] sm:$0xff]  ;;  %v1771_v1 = vld [vmem:[%s1596_s17 + $0x58] sm:$0xff] }
  0x73   : > { %v512_v32 = vmul.f32 %v1722_v39, %v1722_v39  ;;  %v480_v51 = vmax.f32 %v1695_v16, 1e-24  ;;  %v481_v60 = vmax.f32 %v1697_v17, 1e-24  ;;  %1255 = vrsqrt.f32 %v467_v25  ;;  %2129 = vst [vmem:[#allocation21_spill] sm:$0xff] %v1768_v50  ;;  %2130 = vst [vmem:[#allocation22_spill] sm:$0xff] %v1771_v1 }
  0x74   : > { %v534_v61 = vcombine.high %v510_v44, %v510_v44  ;;  %v482_v62 = vmax.f32 %v1703_v21, 1e-24  ;;  %v483_v63 = vmax.f32 %v1705_v30, 1e-24  ;;  %1257 = vrsqrt.f32 %v468_v26 }
  0x75   : > { %1259 = vrsqrt.f32 %v469_v56  ;;  %v535_v0 = vcombine.high %v511_v36, %v511_v36  ;;  %v558_v53 = vsel %vm293_vm0, %v510_v44, 0.0  ;;  %v513_v2 = vmul.f32 %v1732_v33, %v1732_v33 }
  0x76   : > { %v514_v3 = vmul.f32 %v1739_v37, %v1739_v37  ;;  %v1779_v5 = vmul.f32 %v1742_v40, %v1742_v40  ;;  %v536_v4 = vcombine.high %v512_v32, %v512_v32  ;;  %1261 = vrsqrt.f32 %v470_v38 }
  0x77   : > { %v1783_v6 = vmul.f32 %v1749_v47, %v1749_v47  ;;  %v1787_v8 = vmul.f32 %v1752_v49, %v1752_v49  ;;  %v565_v9 = vsel %vm293_vm0, %v534_v61, 0.0  ;;  %1263 = vrsqrt.f32 %v471_v42 }
  0x78   : > { %v1792_v58 = vmul.f32 %v1760_v52, %v1760_v52  ;;  %v559_v10 = vrot.slane %v558_v53, 4  ;;  %v572_v11 = vsel %vm293_vm0, %v511_v36, 0.0  ;;  %v1797_v7 = vmul.f32 %v1765_v57, %v1765_v57 }
  0x79   : > { %v1801_v55 = vmul.f32 %v1768_v50, %v1768_v50  ;;  %v1805_v15 = vmul.f32 %v1771_v1, %v1771_v1  ;;  %v579_v19 = vsel %vm293_vm0, %v535_v0, 0.0  ;;  %1265 = vrsqrt.f32 %v472_v43 }
  0x7a   : > { %v1808_v22 = vpop.eup %1245  ;;  %v566_v23 = vrot.slane %v565_v9, 4  ;;  %v586_v24 = vsel %vm293_vm0, %v512_v32, 0.0  ;;  %v593_v25 = vsel %vm293_vm0, %v536_v4, 0.0  ;;  %1267 = vrsqrt.f32 %v473_v29 }
  0x7b   : > { %v537_v26 = vcombine.high %v513_v2, %v513_v2  ;;  %v538_v56 = vcombine.high %v514_v3, %v514_v3  ;;  %v573_v38 = vrot.slane %v572_v11, 4  ;;  %1269 = vrsqrt.f32 %v474_v45 }
  0x7c   : > { %v1812_v42 = vpop.eup %1247  ;;  %v539_v44 = vcombine.high %v1779_v5, %v1779_v5  ;;  %v560_v36 = vadd.f32 %v559_v10, %v558_v53  ;;  %v580_v61 = vrot.slane %v579_v19, 4  ;;  %1271 = vrsqrt.f32 %v475_v18 }
  0x7d   : > { %v1816_v0 = vpop.eup %1249  ;;  %v587_v32 = vrot.slane %v586_v24, 4  ;;  %v594_v4 = vrot.slane %v593_v25, 4  ;;  %1273 = vrsqrt.f32 %v476_v34  ;;  %v567_v10 = vadd.f32 %v566_v23, %v565_v9 }
  0x7e   : > { %v1820_v29 = vpop.eup %1251  ;;  %1275 = vrsqrt.f32 %v477_v35  ;;  %v574_v43 = vadd.f32 %v573_v38, %v572_v11  ;;  %v600_v41 = vsel %vm293_vm0, %v513_v2, 0.0  ;;  %v561_v34 = vrot.slane %v560_v36, 2 }
  0x7f   : > { %v1828_v59 = vpop.eup %1253  ;;  %1277 = vrsqrt.f32 %v478_v46  ;;  %v581_v45 = vadd.f32 %v580_v61, %v579_v19  ;;  %v601_v53 = vrot.slane %v600_v41, 4  ;;  %v588_v12 = vadd.f32 %v587_v32, %v586_v24 }
  0x80   : > { %v1835_v54 = vpop.eup %1255  ;;  %1279 = vrsqrt.f32 %v479_v48  ;;  %v595_v35 = vadd.f32 %v594_v4, %v593_v25  ;;  %v607_v23 = vsel %vm293_vm0, %v537_v26, 0.0  ;;  %v568_v2 = vrot.slane %v567_v10, 2 }
  0x81   : > { %v1839_v9 = vpop.eup %1257  ;;  %v602_v38 = vadd.f32 %v601_v53, %v600_v41  ;;  %v614_v18 = vsel %vm293_vm0, %v514_v3, 0.0  ;;  %v621_v13 = vsel %vm293_vm0, %v538_v56, 0.0  ;;  %1281 = vrsqrt.f32 %v480_v51 }
  0x82   : > { %v1844_v11 = vpop.eup %1259  ;;  %v575_v46 = vrot.slane %v574_v43, 2  ;;  %v608_v19 = vrot.slane %v607_v23, 4  ;;  %v615_v61 = vrot.slane %v614_v18, 4  ;;  %1283 = vrsqrt.f32 %v481_v60 }
  0x83   : > { %v1850_v14 = vpop.eup %1261  ;;  %v562_v24 = vadd.f32 %v561_v34, %v560_v36  ;;  %v582_v41 = vrot.slane %v581_v45, 2  ;;  %v589_v3 = vrot.slane %v588_v12, 2  ;;  %v596_v26 = vrot.slane %v595_v35, 2 }
  0x84   : > { %v1856_v25 = vpop.eup %1263  ;;  %v622_v56 = vrot.slane %v621_v13, 4  ;;  %v628_v16 = vsel %vm293_vm0, %v1779_v5, 0.0  ;;  %1285 = vrsqrt.f32 %v482_v62  ;;  %v569_v51 = vadd.f32 %v568_v2, %v567_v10 }
  0x85   : > { %v603_v60 = vrot.slane %v602_v38, 2  ;;  %v576_v36 = vadd.f32 %v575_v46, %v574_v43  ;;  %v609_v4 = vadd.f32 %v608_v19, %v607_v23  ;;  %v616_v53 = vadd.f32 %v615_v61, %v614_v18 }
  0x86   : > { %v1864_v32 = vpop.eup %1265  ;;  %v635_v34 = vsel %vm293_vm0, %v539_v44, 0.0  ;;  %1287 = vrsqrt.f32 %v483_v63  ;;  %v563_v5 = vrot.slane %v562_v24, 1  ;;  %v583_v21 = vadd.f32 %v582_v41, %v581_v45 }
  0x87   : > { %v1867_v48 = vpop.eup %1267  ;;  %v629_v62 = vrot.slane %v628_v16, 4  ;;  %v590_v17 = vadd.f32 %v589_v3, %v588_v12  ;;  %v597_v10 = vadd.f32 %v596_v26, %v595_v35  ;;  %v623_v2 = vadd.f32 %v622_v56, %v621_v13 }
  0x88   : > { %v1871_v1 = vpop.eup %1269  ;;  %v642_v43 = vsel %vm293_vm0, %v1783_v6, 0.0  ;;  %v2131_v44 = vmax.f32 %v1715_v31, 1e-24  ;;  %v570_v18 = vrot.slane %v569_v51, 1  ;;  %v604_v46 = vadd.f32 %v603_v60, %v602_v38 }
  0x89   : > { %v1875_v23 = vpop.eup %1271  ;;  %v636_v30 = vrot.slane %v635_v34, 4  ;;  %v577_v45 = vrot.slane %v576_v36, 1  ;;  %v610_v19 = vrot.slane %v609_v4, 2  ;;  %v617_v61 = vrot.slane %v616_v53, 2 }
  0x8a   : > { %1289 = vrsqrt.f32 %v2131_v44  ;;  %v1879_v63 = vpop.eup %1273  ;;  %v2132_v12 = vcombine.high %v1783_v6, %v1783_v6  ;;  %v2133_v41 = vmax.f32 %v1717_v28, 1e-24  ;;  %v584_v31 = vrot.slane %v583_v21, 1 }
  0x8b   : > { %v1885_v13 = vpop.eup %1275  ;;  %v630_v3 = vadd.f32 %v629_v62, %v628_v16  ;;  %v643_v26 = vrot.slane %v642_v43, 4  ;;  %v1891_v56 = vadd.f32 %v563_v5, %v562_v24  ;;  %v591_v60 = vrot.slane %v590_v17, 1 }
  0x8c   : > { %v649_v35 = vsel %vm293_vm0, %v2132_v12, 0.0  ;;  %1291 = vrsqrt.f32 %v2133_v41  ;;  %v1889_v38 = vpop.eup %1277  ;;  %v598_v44 = vrot.slane %v597_v10, 1  ;;  %v624_v50 = vrot.slane %v623_v2, 2 }
  0x8d   : > { %2134 = vst [vmem:[#allocation23_spill] sm:$0xff] %v1889_v38  ;;  %v1893_v57 = vpop.eup %1279  ;;  %v605_v6 = vrot.slane %v604_v46, 1  ;;  %v637_v52 = vadd.f32 %v636_v30, %v635_v34  ;;  %v650_v12 = vrot.slane %v649_v35, 4  ;;  %v656_v49 = vsel %vm293_vm0, %v1787_v8, 0.0 }
  0x8e   : > { %2135 = vst [vmem:[#allocation24_spill] sm:$0xff] %v1893_v57  ;;  %v1897_v28 = vadd.f32 %v570_v18, %v569_v51  ;;  %v1899_v41 = vadd.f32 %v577_v45, %v576_v36  ;;  %v611_v16 = vadd.f32 %v610_v19, %v609_v4  ;;  %v618_v62 = vadd.f32 %v617_v61, %v616_v53  ;;  %v1901_v47 = vpop.eup %1281 }
  0x8f   : > { %2136 = vst [vmem:[#allocation25_spill] sm:$0xff] %v1901_v47  ;;  %v1903_v24 = vadd.f32 %v584_v31, %v583_v21  ;;  %v631_v5 = vrot.slane %v630_v3, 2  ;;  %v644_v40 = vadd.f32 %v643_v26, %v642_v43  ;;  %v2137_v37 = vcombine.high %v1787_v8, %v1787_v8  ;;  %v1909_v30 = vpop.eup %1283 }
  0x90   : > { %2138 = vst [vmem:[#allocation26_spill] sm:$0xff] %v1909_v30  ;;  %v1911_v33 = vadd.f32 %v591_v60, %v590_v17  ;;  %v1913_v51 = vadd.f32 %v598_v44, %v597_v10  ;;  %v625_v36 = vadd.f32 %v624_v50, %v623_v2  ;;  %v657_v4 = vrot.slane %v656_v49, 4 }
  0x91   : > { %v663_v34 = vsel %vm293_vm0, %v2137_v37, 0.0  ;;  %v1915_v53 = vadd.f32 %v605_v6, %v604_v46  ;;  %v638_v18 = vrot.slane %v637_v52, 2  ;;  %v651_v21 = vadd.f32 %v650_v12, %v649_v35  ;;  %v1919_v45 = vpop.eup %1285 }
  0x92   : > { %v670_v43 = vsel %vm293_vm0, %v1792_v58, 0.0  ;;  %2139 = vst [vmem:[#allocation27_spill] sm:$0xff] %v1919_v45  ;;  %v612_v8 = vrot.slane %v611_v16, 1  ;;  %v619_v19 = vrot.slane %v618_v62, 1  ;;  %v664_v37 = vrot.slane %v663_v34, 4 }
  0x93   : > { %v2140_v17 = vcombine.high %v1792_v58, %v1792_v58  ;;  %v632_v61 = vadd.f32 %v631_v5, %v630_v3  ;;  %v645_v50 = vrot.slane %v644_v40, 2  ;;  %v684_v2 = vsel %vm293_vm0, %v1797_v7, 0.0  ;;  %v1931_v31 = vpop.eup %1287 }
  0x94   : > { %v2141_v46 = vcombine.high %v1797_v7, %v1797_v7  ;;  %2142 = vst [vmem:[#allocation28_spill] sm:$0xff] %v1931_v31  ;;  %v626_v26 = vrot.slane %v625_v36, 1  ;;  %v658_v60 = vadd.f32 %v657_v4, %v656_v49  ;;  %v671_v44 = vrot.slane %v670_v43, 4 }
  0x95   : > { %v677_v10 = vsel %vm293_vm0, %v2140_v17, 0.0  ;;  %v698_v58 = vsel %vm293_vm0, %v1801_v55, 0.0  ;;  %v639_v6 = vadd.f32 %v638_v18, %v637_v52  ;;  %v652_v12 = vrot.slane %v651_v21, 2 }
  0x96   : > { %v691_v35 = vsel %vm293_vm0, %v2141_v46, 0.0  ;;  %v678_v3 = vrot.slane %v677_v10, 4  ;;  %v2143_v5 = vcombine.high %v1801_v55, %v1801_v55  ;;  %v1941_v7 = vadd.f32 %v612_v8, %v611_v16 }
  0x97   : > { %v1939_v39 = vpop.eup %1289  ;;  %v665_v46 = vadd.f32 %v664_v37, %v663_v34  ;;  %v685_v27 = vrot.slane %v684_v2, 4  ;;  %v692_v45 = vrot.slane %v691_v35, 4  ;;  %v1943_v49 = vadd.f32 %v619_v19, %v618_v62 }
  0x98   : > { %v705_v17 = vsel %vm293_vm0, %v2143_v5, 0.0  ;;  %2144 = vst [vmem:[#allocation29_spill] sm:$0xff] %v1939_v39  ;;  %v646_v4 = vadd.f32 %v645_v50, %v644_v40  ;;  %v699_v31 = vrot.slane %v698_v58, 4  ;;  %v1947_v18 = vadd.f32 %v626_v26, %v625_v36 }
  0x99   : > { %v706_v47 = vrot.slane %v705_v17, 4  ;;  %v1945_v52 = vpop.eup %1291  ;;  %v633_v30 = vrot.slane %v632_v61, 1  ;;  %v659_v55 = vrot.slane %v658_v60, 2  ;;  %v672_v38 = vadd.f32 %v671_v44, %v670_v43 }
  0x9a   : > { %2145 = vst [vmem:[#allocation30_spill] sm:$0xff] %v1945_v52  ;;  %v640_v5 = vrot.slane %v639_v6, 1  ;;  %v653_v57 = vadd.f32 %v652_v12, %v651_v21  ;;  %v679_v39 = vadd.f32 %v678_v3, %v677_v10  ;;  %v712_v16 = vsel %vm293_vm0, %v1805_v15, 0.0 }
  0x9b   : > { %v666_v34 = vrot.slane %v665_v46, 2  ;;  %v686_v8 = vadd.f32 %v685_v27, %v684_v2  ;;  %v693_v62 = vadd.f32 %v692_v45, %v691_v35  ;;  %v713_v19 = vrot.slane %v712_v16, 4 }
  0x9c   : > { %v647_v40 = vrot.slane %v646_v4, 1  ;;  %v700_v37 = vadd.f32 %v699_v31, %v698_v58  ;;  %v707_v50 = vadd.f32 %v706_v47, %v705_v17  ;;  %v2146_v36 = vcombine.high %v1805_v15, %v1805_v15 }
  0x9d   : > { %v660_v52 = vadd.f32 %v659_v55, %v658_v60  ;;  %v673_v43 = vrot.slane %v672_v38, 2  ;;  %v714_v44 = vadd.f32 %v713_v19, %v712_v16  ;;  %v1955_v10 = vadd.f32 %v633_v30, %v632_v61 }
  0x9e   : > { %v719_v26 = vsel %vm293_vm0, %v2146_v36, 0.0  ;;  %v654_v12 = vrot.slane %v653_v57, 1  ;;  %v680_v3 = vrot.slane %v679_v39, 2  ;;  %v726_v27 = vmax.f32 %v1891_v56, 1e-24 }
  0x9f   : > { %v720_v21 = vrot.slane %v719_v26, 4  ;;  %v667_v45 = vadd.f32 %v666_v34, %v665_v46  ;;  %v687_v2 = vrot.slane %v686_v8, 2  ;;  %v694_v35 = vrot.slane %v693_v62, 2 }
  0xa0   : > { %v1958_v47 = vadd.f32 %v640_v5, %v639_v6  ;;  %v701_v58 = vrot.slane %v700_v37, 2  ;;  %v708_v15 = vrot.slane %v707_v50, 2  ;;  %v727_v17 = vmax.f32 %v1897_v28, 1e-24 }
  0xa1   : > { %v721_v31 = vadd.f32 %v720_v21, %v719_v26  ;;  %v1961_v60 = vadd.f32 %v647_v40, %v646_v4  ;;  %v661_v55 = vrot.slane %v660_v52, 1  ;;  %v674_v16 = vadd.f32 %v673_v43, %v672_v38 }
  0xa2   : > { %v715_v30 = vrot.slane %v714_v44, 2  ;;  %v681_v61 = vadd.f32 %v680_v3, %v679_v39  ;;  %v728_v36 = vmax.f32 %v1899_v41, 1e-24  ;;  %1293 = vrsqrt.f32 %v726_v27 }
  0xa3   : > { %v722_v19 = vrot.slane %v721_v31, 2  ;;  %v1964_v56 = vadd.f32 %v654_v12, %v653_v57  ;;  %v668_v46 = vrot.slane %v667_v45, 1  ;;  %v688_v34 = vadd.f32 %v687_v2, %v686_v8 }
  0xa4   : > { %v695_v6 = vadd.f32 %v694_v35, %v693_v62  ;;  %v702_v5 = vadd.f32 %v701_v58, %v700_v37  ;;  %v709_v26 = vadd.f32 %v708_v15, %v707_v50  ;;  %v729_v21 = vmax.f32 %v1903_v24, 1e-24 }
  0xa5   : > { %1295 = vrsqrt.f32 %v727_v17  ;;  %v662_v28 = vadd.f32 %v661_v55, %v660_v52  ;;  %v675_v4 = vrot.slane %v674_v16, 1  ;;  %v716_v40 = vadd.f32 %v715_v30, %v714_v44 }
  0xa6   : > { %v730_v38 = vmax.f32 %v1911_v33, 1e-24  ;;  %v682_v39 = vrot.slane %v681_v61, 1  ;;  %v723_v43 = vadd.f32 %v722_v19, %v721_v31  ;;  %v731_v41 = vmax.f32 %v1913_v51, 1e-24 }
  0xa7   : > { %1297 = vrsqrt.f32 %v728_v36  ;;  %v669_v57 = vadd.f32 %v668_v46, %v667_v45  ;;  %v689_v12 = vrot.slane %v688_v34, 1  ;;  %v696_v3 = vrot.slane %v695_v6, 1 }
  0xa8   : > { %v732_v8 = vmax.f32 %v1915_v53, 1e-24  ;;  %v703_v62 = vrot.slane %v702_v5, 1  ;;  %v710_v37 = vrot.slane %v709_v26, 1  ;;  %v733_v24 = vmax.f32 %v1941_v7, 1e-24 }
  0xa9   : > { %1299 = vrsqrt.f32 %v729_v21  ;;  %v676_v52 = vadd.f32 %v675_v4, %v674_v16  ;;  %v717_v50 = vrot.slane %v716_v40, 1  ;;  %v734_v44 = vmax.f32 %v1943_v49, 1e-24 }
  0xaa   : > { %1301 = vrsqrt.f32 %v730_v38  ;;  %v683_v33 = vadd.f32 %v682_v39, %v681_v61  ;;  %v724_v27 = vrot.slane %v723_v43, 1  ;;  %v735_v51 = vmax.f32 %v1947_v18, 1e-24  ;;  %v2150_v38 = vld [vmem:[#allocation25_spill] sm:$0xff] }
  0xab   : > { %1303 = vrsqrt.f32 %v731_v41  ;;  %v690_v45 = vadd.f32 %v689_v12, %v688_v34  ;;  %v697_v2 = vadd.f32 %v696_v3, %v695_v6  ;;  %v736_v35 = vmax.f32 %v1955_v10, 1e-24  ;;  %v1343_v3 = vld [vmem:[%s1590_s5 + $0x10] sm:$0xff] }
  0xac   : > { %1305 = vrsqrt.f32 %v732_v8  ;;  %v1974_v53 = vadd.f32 %v703_v62, %v702_v5  ;;  %v1976_v31 = vadd.f32 %v710_v37, %v709_v26  ;;  %v737_v7 = vmax.f32 %v1958_v47, 1e-24 }
  0xad   : > { %1307 = vrsqrt.f32 %v733_v24  ;;  %v1979_v58 = vadd.f32 %v717_v50, %v716_v40  ;;  %v738_v49 = vmax.f32 %v1961_v60, 1e-24  ;;  %v739_v15 = vmax.f32 %v1964_v56, 1e-24  ;;  %v2148_v40 = vld [vmem:[#allocation23_spill] sm:$0xff] }
  0xae   : > { %1309 = vrsqrt.f32 %v734_v44  ;;  %v1983_v18 = vadd.f32 %v724_v27, %v723_v43  ;;  %v740_v17 = vmax.f32 %v662_v28, 1e-24  ;;  %v741_v55 = vmax.f32 %v669_v57, 1e-24  ;;  %v1341_v28 = vld [vmem:[%s1590_s5] sm:$0xff]  ;;  %v1344_v24 = vld [vmem:[%s1590_s5 + $0x18] sm:$0xff] }
  0xaf   : > { %1311 = vrsqrt.f32 %v735_v51  ;;  %v1294_v10 = vpop.eup %1293  ;;  %v742_v16 = vmax.f32 %v676_v52, 1e-24  ;;  %v743_v30 = vmax.f32 %v683_v33, 1e-24  ;;  %v798_v47 = vcombine.low %v1808_v22, %v1812_v42  ;;  %v2155_v44 = vld [vmem:[#allocation12_spill] sm:$0xff] }
  0xb0   : > { %1313 = vrsqrt.f32 %v736_v35  ;;  %v744_v61 = vmax.f32 %v690_v45, 1e-24  ;;  %v745_v19 = vmax.f32 %v697_v2, 1e-24  ;;  %v746_v60 = vmax.f32 %v1974_v53, 1e-24 }
  0xb1   : > { %1315 = vrsqrt.f32 %v737_v7  ;;  %v747_v56 = vmax.f32 %v1976_v31, 1e-24  ;;  %v748_v46 = vmax.f32 %v1979_v58, 1e-24  ;;  %v799_v34 = vcombine.low %v1816_v0, %v1820_v29  ;;  %v1345_v51 = vld [vmem:[%s1590_s5 + $0x20] sm:$0xff]  ;;  %v1346_v2 = vld [vmem:[%s1590_s5 + $0x28] sm:$0xff] }
  0xb2   : > { %v1296_v36 = vpop.eup %1295  ;;  %1317 = vrsqrt.f32 %v738_v49  ;;  %v749_v6 = vmax.f32 %v1983_v18, 1e-24  ;;  %v800_v22 = vcombine.low %v1828_v59, %v1835_v54  ;;  %v801_v26 = vcombine.low %v1839_v9, %v1844_v11  ;;  %v2147_v11 = vld [vmem:[#allocation24_spill] sm:$0xff]  ;;  %v1347_v53 = vld [vmem:[%s1590_s5 + $0x30] sm:$0xff]  ;;  %v2156_v49 = vld [vmem:[#allocation13_spill] sm:$0xff] }
  0xb3   : > { %1319 = vrsqrt.f32 %v739_v15  ;;  %v858_v42 = vcombine.low %v1294_v10, %v1296_v36  ;;  %v802_v21 = vcombine.low %v1850_v14, %v1856_v25  ;;  %v822_v4 = vmul.f32 %v1341_v28, %v798_v47  ;;  %v2149_v25 = vld [vmem:[#allocation26_spill] sm:$0xff] }
  0xb4   : > { %v1298_v5 = vpop.eup %1297  ;;  %1321 = vrsqrt.f32 %v740_v17  ;;  %v803_v0 = vcombine.low %v1864_v32, %v1867_v48  ;;  %v804_v29 = vcombine.low %v1871_v1, %v1875_v23  ;;  %v805_v9 = vcombine.low %v1879_v63, %v1885_v13  ;;  %v2151_v48 = vld [vmem:[#allocation28_spill] sm:$0xff]  ;;  %v2152_v32 = vld [vmem:[#allocation27_spill] sm:$0xff]  ;;  %v1342_v23 = vld [vmem:[%s1590_s5 + $0x8] sm:$0xff] }
  0xb5   : > { %1323 = vrsqrt.f32 %v741_v55  ;;  %v882_v59 = vmul.f32 %v858_v42, %v1701_v20  ;;  %v806_v14 = vcombine.low %v2148_v40, %v2147_v11  ;;  %v807_v39 = vcombine.low %v2150_v38, %v2149_v25  ;;  %v2153_v63 = vld [vmem:[#allocation30_spill] sm:$0xff]  ;;  %v2154_v13 = vld [vmem:[#allocation29_spill] sm:$0xff]  ;;  %v1348_v55 = vld [vmem:[%s1590_s5 + $0x38] sm:$0xff] }
  0xb6   : > { %v1300_v54 = vpop.eup %1299  ;;  %1325 = vrsqrt.f32 %v742_v16  ;;  %v808_v1 = vcombine.low %v2152_v32, %v2151_v48  ;;  %v823_v41 = vmul.f32 %v1342_v23, %v799_v34  ;;  %v809_v12 = vcombine.low %v2154_v13, %v2153_v63  ;;  %v1349_v16 = vld [vmem:[%s1590_s5 + $0x40] sm:$0xff] }
  0xb7   : > { %v1302_v43 = vpop.eup %1301  ;;  %1327 = vrsqrt.f32 %v743_v30  ;;  %v859_v20 = vcombine.low %v1298_v5, %v1300_v54  ;;  %v824_v8 = vmul.f32 %v1343_v3, %v800_v22  ;;  %v894_v62 = vsub.f32 %v822_v4, %v882_v59  ;;  %v1350_v22 = vld [vmem:[%s1590_s5 + $0x48] sm:$0xff]  ;;  %v1351_v5 = vld [vmem:[%s1590_s5 + $0x50] sm:$0xff] }
  0xb8   : > { %v1304_v57 = vpop.eup %1303  ;;  %1329 = vrsqrt.f32 %v744_v61  ;;  %v825_v52 = vmul.f32 %v1344_v24, %v801_v26  ;;  %v826_v45 = vmul.f32 %v1345_v51, %v802_v21  ;;  %v827_v35 = vmul.f32 %v1346_v2, %v803_v0  ;;  %v2158_v0 = vld [vmem:[#allocation15_spill] sm:$0xff]  ;;  %v2160_v3 = vld [vmem:[#allocation17_spill] sm:$0xff] }
  0xb9   : > { %v1306_v37 = vpop.eup %1305  ;;  %1331 = vrsqrt.f32 %v745_v19  ;;  %v860_v50 = vcombine.low %v1302_v43, %v1304_v57  ;;  %v883_v33 = vmul.f32 %v859_v20, %v2155_v44  ;;  %v828_v31 = vmul.f32 %v1347_v53, %v804_v29  ;;  %v2159_v43 = vld [vmem:[#allocation16_spill] sm:$0xff] }
  0xba   : > { %v1308_v27 = vpop.eup %1307  ;;  %1333 = vrsqrt.f32 %v746_v60  ;;  %v829_v10 = vmul.f32 %v1348_v55, %v805_v9  ;;  %v2025_v30 = vmul.f32 %v1349_v16, %v806_v14  ;;  %v918_v47 = vcombine.high %v894_v62, %v894_v62  ;;  %v2157_v60 = vld [vmem:[#allocation14_spill] sm:$0xff]  ;;  %v1352_v9 = vld [vmem:[%s1590_s5 + $0x58] sm:$0xff] }
  0xbb   : > { %v1310_v7 = vpop.eup %1309  ;;  %1335 = vrsqrt.f32 %v747_v56  ;;  %v861_v58 = vcombine.low %v1306_v37, %v1308_v27  ;;  %v884_v15 = vmul.f32 %v860_v50, %v2156_v49  ;;  %v895_v18 = vsub.f32 %v823_v41, %v883_v33  ;;  %v2162_v16 = vld [vmem:[#allocation19_spill] sm:$0xff] }
  0xbc   : > { %v1312_v17 = vpop.eup %1311  ;;  %1337 = vrsqrt.f32 %v748_v46  ;;  %v2029_v42 = vmul.f32 %v1350_v22, %v807_v39  ;;  %v2032_v26 = vmul.f32 %v1351_v5, %v808_v1  ;;  %v942_v21 = vsel %vm293_vm0, %v894_v62, 0.0 }
  0xbd   : > { %v1314_v61 = vpop.eup %1313  ;;  %1339 = vrsqrt.f32 %v749_v6  ;;  %v862_v19 = vcombine.low %v1310_v7, %v1312_v17  ;;  %v885_v36 = vmul.f32 %v861_v58, %v2157_v60  ;;  %v896_v56 = vsub.f32 %v824_v8, %v884_v15 }
  0xbe   : > { %v1316_v34 = vpop.eup %1315  ;;  %v919_v46 = vcombine.high %v895_v18, %v895_v18  ;;  %v2037_v11 = vmul.f32 %v1352_v9, %v809_v12  ;;  %v953_v14 = vsel %vm293_vm0, %v918_v47, 0.0  ;;  %v964_v25 = vsel %vm293_vm0, %v895_v18, 0.0  ;;  %v2164_v9 = vld [vmem:[#allocation21_spill] sm:$0xff] }
  0xbf   : > { %v1318_v28 = vpop.eup %1317  ;;  %v863_v4 = vcombine.low %v1314_v61, %v1316_v34  ;;  %v886_v29 = vmul.f32 %v862_v19, %v2158_v0  ;;  %v897_v6 = vsub.f32 %v825_v52, %v885_v36  ;;  %v920_v59 = vcombine.high %v896_v56, %v896_v56 }
  0xc0   : > { %v1320_v54 = vpop.eup %1319  ;;  %v943_v40 = vsel %vm293_vm0, %v896_v56, 0.0  ;;  %v975_v63 = vsel %vm293_vm0, %v919_v46, 0.0  ;;  %v2163_v46 = vld [vmem:[#allocation20_spill] sm:$0xff] }
  0xc1   : > { %v1322_v38 = vpop.eup %1321  ;;  %v864_v39 = vcombine.low %v1318_v28, %v1320_v54  ;;  %v887_v48 = vmul.f32 %v863_v4, %v2159_v43  ;;  %v898_v32 = vsub.f32 %v826_v45, %v886_v29  ;;  %v921_v1 = vcombine.high %v897_v6, %v897_v6  ;;  %v2161_v45 = vld [vmem:[#allocation18_spill] sm:$0xff] }
  0xc2   : > { %v1324_v23 = vpop.eup %1323  ;;  %v944_v41 = vadd.f32 %v943_v40, %v942_v21  ;;  %v954_v20 = vsel %vm293_vm0, %v920_v59, 0.0  ;;  %v965_v57 = vsel %vm293_vm0, %v897_v6, 0.0 }
  0xc3   : > { %v1326_v13 = vpop.eup %1325  ;;  %v865_v12 = vcombine.low %v1322_v38, %v1324_v23  ;;  %v888_v8 = vmul.f32 %v864_v39, %v2160_v3  ;;  %v899_v62 = vsub.f32 %v827_v35, %v887_v48  ;;  %v922_v37 = vcombine.high %v898_v32, %v898_v32  ;;  %v2165_v48 = vld [vmem:[#allocation22_spill] sm:$0xff] }
  0xc4   : > { %v1328_v24 = vpop.eup %1327  ;;  %v945_v52 = vsel %vm293_vm0, %v898_v32, 0.0  ;;  %v955_v50 = vadd.f32 %v954_v20, %v953_v14  ;;  %v966_v44 = vadd.f32 %v965_v57, %v964_v25  ;;  %v976_v33 = vsel %vm293_vm0, %v921_v1, 0.0 }
  0xc5   : > { %v1330_v27 = vpop.eup %1329  ;;  %v866_v51 = vcombine.low %v1326_v13, %v1328_v24  ;;  %v889_v2 = vmul.f32 %v865_v12, %v2161_v45  ;;  %v900_v53 = vsub.f32 %v828_v31, %v888_v8  ;;  %v923_v7 = vcombine.high %v899_v62, %v899_v62 }
  0xc6   : > { %v1332_v58 = vpop.eup %1331  ;;  %v946_v49 = vadd.f32 %v945_v52, %v944_v41  ;;  %v956_v15 = vsel %vm293_vm0, %v922_v37, 0.0  ;;  %v967_v35 = vsel %vm293_vm0, %v899_v62, 0.0  ;;  %v977_v18 = vadd.f32 %v976_v33, %v975_v63 }
  0xc7   : > { %v1334_v17 = vpop.eup %1333  ;;  %v867_v55 = vcombine.low %v1330_v27, %v1332_v58  ;;  %v890_v47 = vmul.f32 %v866_v51, %v2162_v16  ;;  %v901_v61 = vsub.f32 %v829_v10, %v889_v2  ;;  %v924_v19 = vcombine.high %v900_v53, %v900_v53 }
  0xc8   : > { %v1336_v60 = vpop.eup %1335  ;;  %v947_v36 = vsel %vm293_vm0, %v900_v53, 0.0  ;;  %v957_v56 = vadd.f32 %v956_v15, %v955_v50  ;;  %v968_v34 = vadd.f32 %v967_v35, %v966_v44  ;;  %v978_v31 = vsel %vm293_vm0, %v923_v7, 0.0 }
  0xc9   : > { %v1338_v22 = vpop.eup %1337  ;;  %v868_v5 = vcombine.low %v1334_v17, %v1336_v60  ;;  %v891_v21 = vmul.f32 %v867_v55, %v2163_v46  ;;  %v902_v28 = vsub.f32 %v2025_v30, %v890_v47  ;;  %v925_v4 = vcombine.high %v901_v61, %v901_v61 }
  0xca   : > { %v1340_v0 = vpop.eup %1339  ;;  %v948_v29 = vadd.f32 %v947_v36, %v946_v49  ;;  %v958_v6 = vsel %vm293_vm0, %v924_v19, 0.0  ;;  %v969_v10 = vsel %vm293_vm0, %v901_v61, 0.0  ;;  %v979_v59 = vadd.f32 %v978_v31, %v977_v18 }
  0xcb   : > { %v869_v54 = vcombine.low %v1338_v22, %v1340_v0  ;;  %v892_v40 = vmul.f32 %v868_v5, %v2164_v9  ;;  %v903_v14 = vsub.f32 %v2029_v42, %v891_v21  ;;  %v926_v25 = vcombine.high %v902_v28, %v902_v28 }
  0xcc   : > { %v949_v38 = vsel %vm293_vm0, %v902_v28, 0.0  ;;  %v959_v39 = vadd.f32 %v958_v6, %v957_v56  ;;  %v970_v43 = vadd.f32 %v969_v10, %v968_v34  ;;  %v980_v30 = vsel %vm293_vm0, %v925_v4, 0.0 }
  0xcd   : > { %v893_v32 = vmul.f32 %v869_v54, %v2165_v48  ;;  %v904_v1 = vsub.f32 %v2032_v26, %v892_v40  ;;  %v927_v23 = vcombine.high %v903_v14, %v903_v14  ;;  %v950_v41 = vadd.f32 %v949_v38, %v948_v29 }
  0xce   : > { %v960_v20 = vsel %vm293_vm0, %v926_v25, 0.0  ;;  %v971_v57 = vsel %vm293_vm0, %v903_v14, 0.0  ;;  %v981_v63 = vadd.f32 %v980_v30, %v979_v59 }
  0xcf   : > { %v905_v42 = vsub.f32 %v2037_v11, %v893_v32  ;;  %v928_v13 = vcombine.high %v904_v1, %v904_v1  ;;  %v951_v12 = vsel %vm293_vm0, %v904_v1, 0.0  ;;  %v961_v3 = vadd.f32 %v960_v20, %v959_v39 }
  0xd0   : > { %v952_v8 = vadd.f32 %v951_v12, %v950_v41  ;;  %v972_v62 = vadd.f32 %v971_v57, %v970_v43  ;;  %v982_v37 = vsel %vm293_vm0, %v927_v23, 0.0  ;;  %989 = sbr.rel (%p1158_p7) target bundleno = 217 (0xd9), region = 40 }
  0xd1   : > { %v929_v24 = vcombine.high %v905_v42, %v905_v42  ;;  %v962_v26 = vsel %vm293_vm0, %v928_v13, 0.0  ;;  %v973_v52 = vsel %vm293_vm0, %v905_v42, 0.0  ;;  %v983_v50 = vadd.f32 %v982_v37, %v981_v63 }
  0xd2   : > { %v963_v44 = vadd.f32 %v962_v26, %v961_v3  ;;  %v974_v33 = vadd.f32 %v973_v52, %v972_v62 }
  0xd3   : > { %v984_v27 = vsel %vm293_vm0, %v929_v24, 0.0 }
  0xd4   : > { %v985_v51 = vadd.f32 %v984_v27, %v983_v50 }
  0xd5   : > { %v994_v11 = vcombine.low %v952_v8, %v963_v44 }
  0xd6   : > { %v995_v45 = vcombine.low %v974_v33, %v985_v51 }
  0xd7   : > { %998 = vst [vmem:[#allocation2] sm:$0xff] %v994_v11 }
  0xd8   : > { %999 = vst [vmem:[#allocation2 + $0x8] sm:$0xff] %v995_v45 }
  0xd9 PF: > { %p1159_p9 = scmp.eq.s32.totalorder %s1469_s12, 0 }
  0xdb   : > { %1003 = sbr.rel (%p1159_p9) target bundleno = 229 (0xe5), region = 44 }
  0xe0   : > { %v1004_v2 = vld [vmem:[#allocation2] sm:$0xff]  ;;  %v1010_v53 = vcombine.low %v952_v8, %v963_v44  ;;  %v1005_v7 = vld [vmem:[#allocation2 + $0x8] sm:$0xff]  ;;  %v1011_v58 = vcombine.low %v974_v33, %v985_v51 }
  0xe2   : > { %v1014_v49 = vadd.f32 %v1010_v53, %v1004_v2  ;;  %v1015_v15 = vadd.f32 %v1011_v58, %v1005_v7 }
  0xe4   : > { %1016 = vst [vmem:[#allocation2] sm:$0xff] %v1014_v49  ;;  %1017 = vst [vmem:[#allocation2 + $0x8] sm:$0xff] %v1015_v15 }
  0xe5 PF: > { %p1160_p10 = scmp.ne.s32.totalorder %s1469_s12, 1 }
  0xe7   : > { %1021 = sbr.rel (%p1160_p10) target bundleno = 451 (0x1c3), region = 48 }
  0xec   : > { %v1022_v35 = vld [vmem:[#allocation2] sm:$0xff]  ;;  %v1023_v18 = vld [vmem:[#allocation2 + $0x8] sm:$0xff] }
  0xed   : > { %v1024_v17 = vmul.f32 0.083333336, %v1022_v35  ;;  %v1025_v55 = vmul.f32 0.083333336, %v1023_v18 }
  0xef   : > { %v1026_v16 = vmul.f32 %v1024_v17, %v1024_v17  ;;  %v1027_v47 = vmul.f32 %v1025_v55, %v1025_v55 }
  0xf1   : > { %v1030_v61 = vcombine.high %v1026_v16, %v1026_v16  ;;  %v1031_v19 = vcombine.high %v1027_v47, %v1027_v47  ;;  %v1034_v60 = vsel %vm293_vm0, %v1026_v16, 0.0  ;;  %v1037_v56 = vsel %vm293_vm0, %v1027_v47, 0.0 }
  0xf3   : > { %v1035_v36 = vsel %vm293_vm0, %v1030_v61, 0.0  ;;  %v1039_v31 = vsel %vm293_vm0, %v1031_v19, 0.0 }
  0xf4   : > { %v1036_v34 = vadd.f32 %v1035_v36, %v1034_v60 }
  0xf6   : > { %v1038_v22 = vadd.f32 %v1037_v56, %v1036_v34 }
  0xf8   : > { %v1040_v5 = vadd.f32 %v1039_v31, %v1038_v22 }
  0xfa   : > { %1041 = vadd.xlane.f32.xlu0 %v1040_v5 }
 0x183   : > { %v1042_v46 = vpop.xlane.xlu0 %1041 }
 0x184   : > { %v1043_v21 = vrot.slane %v1042_v46, 4 }
 0x186   : > { %v1044_v28 = vadd.f32 %v1043_v21, %v1042_v46 }
 0x188   : > { %v1045_v4 = vrot.slane %v1044_v28, 2 }
 0x18a   : > { %v1046_v0 = vadd.f32 %v1045_v4, %v1044_v28 }
 0x18c   : > { %v1047_v29 = vrot.slane %v1046_v0, 1 }
 0x18e   : > { %v1048_v6 = vadd.f32 %v1047_v29, %v1046_v0 }
 0x190   : > { %1174 = vpush %v1048_v6 }
 0x1c1   : > { %s1175_s12 = spop %1174 }
 0x1c2   : > { %1051 = sst [smem:[#allocation8]] %s1175_s12 }
 0x1c3 PF: > { %p1192_p3 = scmp.eq.s32.totalorder %s1150_s15, 1  ;;  %s1483_s19 = smov [#allocation8]  }
 0x1c5   : > { %1181 = dma.smem_to_hbm (%p1192_p3), %s1483_s19, 16, %s2105_s2, [#allocation5]  }
 0x1c6   : > { %1452 = dma.done.wait (%p1192_p3), [#allocation5], 16  }
 0x1c7   : > { %1454 = vsyncadd (%p1192_p3), [#allocation5], 4294967280 }
 0x1c8   : > { %1067 = sfence }
 0x1c9 PF: > { %s19_s14 = sadd.s32 1, %s1477_s14   ;;  %s2166_s9 = smov %s1461_s10 }
 0x1ca   : > { %p16_p4 = scmp.ge.s32.totalorder %s19_s14, 4   ;;  %s2167_s10 = smov %s1465_s11 }
 0x1cb   : > { %s2168_s11 = smov %s1546_s20  ;;  %s2169_s12 = smov %s1473_s13 }
 0x1cc   : > { %s2170_s13 = smov %s2172_s16  ;;  %18 = sbr.rel (!%p16_p4) target bundleno = 7 (0x7), region = 92 }
 0x1d1   :  { %1073 = vsyncpa [#allocation4], 1 }
 0x1d2   :  { %1075 = vsyncpa [#allocation4 + $0x1], 1 }
 0x1d3   :  { %1076 = vsyncpa [#allocation7], 1 }
 0x1d4   :  { %1078 = vsyncpa [#allocation7 + $0x1], 1 }
 0x1d5   :  { %1079 = vsyncpa [#allocation5], 1 }
 0x1d6   :  { %1081 = vsyncpa [#allocation5 + $0x1], 1 }

</bundles_post_ra>
